<compile_context>
chip_gen: v7x
topology: tpu7x:2x2x1
jax: 0.10.0
libtpu: 0.0.40
codegen_flags: <defaults>
</compile_context>

<pallas_src>
import math

import jax
import jax.numpy as jnp
from jax.experimental import pallas as pl
from jax.experimental.pallas import tpu as pltpu


# ----------------------------------------------------------------------------
# BaseNCE "__init__" constant machinery (exact port of the PyTorch logic).
# ----------------------------------------------------------------------------
def _logit(p):
    return math.log(p / (1.0 - p))


def _expit(x):
    return 1.0 / (1.0 + math.exp(-x))


class BaseNCEParams:
    def __init__(self, alpha=0.5, k=None, log_k=None):
        assert k is None or log_k is None, "Cannot define both k and log_k"
        if log_k is not None:
            self.log_k = log_k
            self.k = math.exp(self.log_k)
            self.alpha_logit = self.log_k
            self.alpha = _expit(self.log_k)
        elif k is not None:
            self.k = k
            self.log_k = math.log(self.k)
            self.alpha_logit = self.log_k
            self.alpha = _expit(self.log_k)
        else:
            self.alpha = alpha
            self.alpha_logit = _logit(alpha)
            self.log_k = self.alpha_logit
            self.k = math.exp(self.log_k)

    def __repr__(self):
        return (f"BaseNCEParams(alpha={self.alpha:.1e}, k={self.k:.1e}, "
                f"log_k={self.log_k:.1e})")


# ----------------------------------------------------------------------------
# Tiling plan helpers.
# ----------------------------------------------------------------------------
_MAX_TILE_N = 2048            # lanes per tile (multiple of 128)
_MAX_TILE_B = 1024            # cap on rows per tile
_TARGET_TILE_ELEMS = 1 << 20  # ~4 MiB f32 per pipeline buffer
_VMEM_LIMIT_BYTES = 48 << 20  # < v7x 64 MiB physical VMEM; ample on v5e/v6e


def _flatten_shape(B, N):
    """Lane-dense flat (R, L) view of a (B, N) array when total size allows."""
    total = B * N
    for lanes in (2048, 1024, 512, 256, 128):
        if total % lanes == 0:
            return total // lanes, lanes
    return B, N


def _sublane_quantum(*dtypes):
    itemsize = min(jnp.dtype(d).itemsize for d in dtypes)
    return 32 // itemsize      # 8 for f32, 16 for bf16, 32 for int8/fp8


def _pick_lane_tile(L):
    if L <= _MAX_TILE_N:
        return L               # full-extent block is always legal
    nb = pl.cdiv(L, _MAX_TILE_N)
    t = pl.cdiv(L, nb)         # near-even blocks, no tiny remainder tiles
    return ((t + 127) // 128) * 128


def _pick_row_tile(R, tile_n, quantum):
    if R <= quantum:
        return R               # full-extent block is always legal
    target = max(quantum, min(_MAX_TILE_B, _TARGET_TILE_ELEMS // tile_n))
    nb = pl.cdiv(R, target)
    if nb < 2 and R >= 2 * quantum:
        nb = 2                 # >=2 blocks so v7x megacore has work to shard
    if nb <= 1:
        return R
    rows = pl.cdiv(R, nb)      # near-even blocks
    return ((rows + quantum - 1) // quantum) * quantum


def _softplus(x):
    # Numerically stable softplus written explicitly: max(x,0)+log1p(exp(-|x|)).
    return jnp.maximum(x, 0.0) + jnp.log1p(jnp.exp(-jnp.abs(x)))


# ----------------------------------------------------------------------------
# Kernels (log_k baked in as a Python float literal — no captured constants).
# ----------------------------------------------------------------------------
def _make_nce_kernel(log_k, out_dtype):
    log_k = float(log_k)

    def kernel(pos_ref, neg_ref, attract_ref, repel_ref):
        pos = pos_ref[...].astype(jnp.float32)   # upcast in vregs, not in HBM
        neg = neg_ref[...].astype(jnp.float32)
        attract_ref[...] = _softplus(log_k - pos).astype(out_dtype)
        repel_ref[...] = _softplus(neg - log_k).astype(out_dtype)

    return kernel


def _make_nce_rowsum_kernel(log_k, n_valid, tile_n, mask_cols):
    log_k = float(log_k)

    def kernel(pos_ref, neg_ref, arow_ref, rrow_ref):
        j = pl.program_id(1)

        @pl.when(j == 0)
        def _():
            arow_ref[...] = jnp.zeros_like(arow_ref)
            rrow_ref[...] = jnp.zeros_like(rrow_ref)

        pos = pos_ref[...].astype(jnp.float32)
        neg = neg_ref[...].astype(jnp.float32)
        a = _softplus(log_k - pos)
        r = _softplus(neg - log_k)
        if mask_cols:  # only emitted when the lane axis is ragged
            cols = jax.lax.broadcasted_iota(jnp.int32, a.shape, 1) + j * tile_n
            valid = cols < n_valid
            a = jnp.where(valid, a, 0.0)
            r = jnp.where(valid, r, 0.0)
        arow_ref[...] += jnp.sum(a, axis=1, keepdims=True)
        rrow_ref[...] += jnp.sum(r, axis=1, keepdims=True)

    return kernel


# ----------------------------------------------------------------------------
# Wrappers.
# ----------------------------------------------------------------------------
def base_nce_terms(pos_logits, neg_logits, params: BaseNCEParams, *,
                   out_dtype=None):
    """Elementwise (attract, repel) NCE terms; shape-preserving."""
    assert pos_logits.shape == neg_logits.shape
    assert pos_logits.ndim == 2, "expected 2-D (batch, samples) logits"
    B, N = pos_logits.shape
    in_dtype = pos_logits.dtype
    out_dtype = jnp.dtype(in_dtype if out_dtype is None else out_dtype)

    R, L = _flatten_shape(B, N)
    if (R, L) != (B, N):  # contiguous reshape — free at the XLA level
        pos_logits = pos_logits.reshape(R, L)
        neg_logits = neg_logits.reshape(R, L)

    quantum = _sublane_quantum(in_dtype, out_dtype)
    tile_n = _pick_lane_tile(L)
    tile_b = _pick_row_tile(R, tile_n, quantum)
    grid = (pl.cdiv(R, tile_b), pl.cdiv(L, tile_n))
    blk = pl.BlockSpec((tile_b, tile_n), lambda i, j: (i, j))

    total = B * N
    in_bytes = jnp.dtype(in_dtype).itemsize
    out_bytes = out_dtype.itemsize
    cost = pl.CostEstimate(
        flops=12 * total,
        transcendentals=4 * total,
        bytes_accessed=total * (2 * in_bytes + 2 * out_bytes),
    )

    attract, repel = pl.pallas_call(
        _make_nce_kernel(params.log_k, out_dtype),
        out_shape=(jax.ShapeDtypeStruct((R, L), out_dtype),
                   jax.ShapeDtypeStruct((R, L), out_dtype)),
        grid=grid,
        in_specs=[blk, blk],
        out_specs=(blk, blk),
        compiler_params=pltpu.CompilerParams(
            dimension_semantics=("parallel", "parallel"),
            vmem_limit_bytes=_VMEM_LIMIT_BYTES,
        ),
        cost_estimate=cost,
    )(pos_logits, neg_logits)

    if (R, L) != (B, N):
        attract = attract.reshape(B, N)
        repel = repel.reshape(B, N)
    return attract, repel


def base_nce_mean_terms(pos_logits, neg_logits, params: BaseNCEParams):
    """Fused-reduction variant: scalar mean(attract), mean(repel).

    Accumulates per-row partial sums inside the kernel (tiny (R,1) outputs)
    instead of materializing two full (B, N) arrays — ~2x less HBM traffic
    for the common `loss = attract.mean() + repel.mean()` pattern.
    """
    assert pos_logits.shape == neg_logits.shape
    assert pos_logits.ndim == 2, "expected 2-D (batch, samples) logits"
    B, N = pos_logits.shape
    in_dtype = pos_logits.dtype

    R, L = _flatten_shape(B, N)
    if (R, L) != (B, N):
        pos_logits = pos_logits.reshape(R, L)
        neg_logits = neg_logits.reshape(R, L)

    quantum = _sublane_quantum(in_dtype, jnp.float32)
    tile_n = _pick_lane_tile(L)
    tile_b = _pick_row_tile(R, tile_n, quantum)
    grid = (pl.cdiv(R, tile_b), pl.cdiv(L, tile_n))
    mask_cols = (L % tile_n) != 0

    blk_in = pl.BlockSpec((tile_b, tile_n), lambda i, j: (i, j))
    # Row-partial accumulator: same block for every j -> resident across the
    # (arbitrary) lane-reduction axis; written back once per row block.
    blk_row = pl.BlockSpec((tile_b, 1), lambda i, j: (i, 0))

    total = B * N
    in_bytes = jnp.dtype(in_dtype).itemsize
    cost = pl.CostEstimate(
        flops=14 * total,
        transcendentals=4 * total,
        bytes_accessed=total * 2 * in_bytes + 2 * R * 4,
    )

    arow, rrow = pl.pallas_call(
        _make_nce_rowsum_kernel(params.log_k, L, tile_n, mask_cols),
        out_shape=(jax.ShapeDtypeStruct((R, 1), jnp.float32),
                   jax.ShapeDtypeStruct((R, 1), jnp.float32)),
        grid=grid,
        in_specs=[blk_in, blk_in],
        out_specs=(blk_row, blk_row),
        compiler_params=pltpu.CompilerParams(
            dimension_semantics=("parallel", "arbitrary"),
            vmem_limit_bytes=_VMEM_LIMIT_BYTES,
        ),
        cost_estimate=cost,
    )(pos_logits, neg_logits)

    denom = jnp.float32(total)
    return jnp.sum(arow) / denom, jnp.sum(rrow) / denom


# ----------------------------------------------------------------------------
# Reference (plain JAX) for correctness checks.
# ----------------------------------------------------------------------------
def _ref_terms(pos_logits, neg_logits, params):
    lk = jnp.float32(params.log_k)
    pos = pos_logits.astype(jnp.float32)
    neg = neg_logits.astype(jnp.float32)
    attract = -jax.nn.log_sigmoid(pos - lk)
    repel = -jax.nn.log_sigmoid(-(neg - lk))
    return attract, repel


if __name__ == "__main__":
    key = jax.random.PRNGKey(0)
    ks = jax.random.split(key, 8)

    # --- elementwise terms, f32, flattened lane-dense path -------------------
    params = BaseNCEParams(alpha=0.5)            # log_k = 0, k = 1
    B, N = 32, 512
    pos = jax.random.normal(ks[0], (B, N), dtype=jnp.float32) * 3.0
    neg = jax.random.normal(ks[1], (B, N), dtype=jnp.float32) * 3.0
    a, r = base_nce_terms(pos, neg, params)
    jax.block_until_ready((a, r))
    ra, rr = _ref_terms(pos, neg, params)
    assert a.shape == (B, N) and r.shape == (B, N)
    assert jnp.allclose(a, ra, atol=1e-5), "attract mismatch (f32)"
    assert jnp.allclose(r, rr, atol=1e-5), "repel mismatch (f32)"

    # --- multi-block grid + non-zero log_k (k = 5) ----------------------------
    params_k = BaseNCEParams(k=5.0)
    B2, N2 = 256, 1024
    pos2 = jax.random.normal(ks[2], (B2, N2), dtype=jnp.float32)
    neg2 = jax.random.normal(ks[3], (B2, N2), dtype=jnp.float32)
    a2, r2 = base_nce_terms(pos2, neg2, params_k)
    jax.block_until_ready((a2, r2))
    ra2, rr2 = _ref_terms(pos2, neg2, params_k)
    assert jnp.allclose(a2, ra2, atol=1e-5), "attract mismatch (k=5)"
    assert jnp.allclose(r2, rr2, atol=1e-5), "repel mismatch (k=5)"

    # --- ragged, unflattenable shape (masked edge tiles) ----------------------
    B3, N3 = 20, 300
    pos3 = jax.random.normal(ks[4], (B3, N3), dtype=jnp.float32)
    neg3 = jax.random.normal(ks[5], (B3, N3), dtype=jnp.float32)
    a3, r3 = base_nce_terms(pos3, neg3, params)
    jax.block_until_ready((a3, r3))
    ra3, rr3 = _ref_terms(pos3, neg3, params)
    assert jnp.allclose(a3, ra3, atol=1e-5), "attract mismatch (ragged)"
    assert jnp.allclose(r3, rr3, atol=1e-5), "repel mismatch (ragged)"

    # --- bf16 inputs, f32 outputs (dtype-aware sublane quantum) --------------
    B4, N4 = 48, 640
    pos4 = (jax.random.normal(ks[6], (B4, N4), dtype=jnp.float32)
            .astype(jnp.bfloat16))
    neg4 = (jax.random.normal(ks[7], (B4, N4), dtype=jnp.float32)
            .astype(jnp.bfloat16))
    a4, r4 = base_nce_terms(pos4, neg4, params_k, out_dtype=jnp.float32)
    jax.block_until_ready((a4, r4))
    ra4, rr4 = _ref_terms(pos4, neg4, params_k)
    assert jnp.allclose(a4, ra4, atol=1e-5), "attract mismatch (bf16 in)"
    assert jnp.allclose(r4, rr4, atol=1e-5), "repel mismatch (bf16 in)"

    # --- fused mean reduction -------------------------------------------------
    B5, N5 = 64, 768
    pos5 = jax.random.normal(jax.random.PRNGKey(1), (B5, N5), dtype=jnp.float32)
    neg5 = jax.random.normal(jax.random.PRNGKey(2), (B5, N5), dtype=jnp.float32)
    ma, mr = base_nce_mean_terms(pos5, neg5, params_k)
    jax.block_until_ready((ma, mr))
    ra5, rr5 = _ref_terms(pos5, neg5, params_k)
    assert jnp.allclose(ma, jnp.mean(ra5), rtol=1e-5, atol=1e-5), \
        "mean attract mismatch"
    assert jnp.allclose(mr, jnp.mean(rr5), rtol=1e-5, atol=1e-5), \
        "mean repel mismatch"

    # --- fused mean with ragged lane tiles (column-mask path) -----------------
    B6, N6 = 4, 2177
    pos6 = jax.random.normal(jax.random.PRNGKey(3), (B6, N6), dtype=jnp.float32)
    neg6 = jax.random.normal(jax.random.PRNGKey(4), (B6, N6), dtype=jnp.float32)
    ma6, mr6 = base_nce_mean_terms(pos6, neg6, params)
    jax.block_until_ready((ma6, mr6))
    ra6, rr6 = _ref_terms(pos6, neg6, params)
    assert jnp.allclose(ma6, jnp.mean(ra6), rtol=1e-5, atol=1e-5), \
        "mean attract mismatch (ragged lanes)"
    assert jnp.allclose(mr6, jnp.mean(rr6), rtol=1e-5, atol=1e-5), \
        "mean repel mismatch (ragged lanes)"

    print("KERNEL_OK")
</pallas_src>

<mosaic_0001>
module attributes {stable_mosaic.version = 11 : i64} {
  func.func @kernel(%arg0: i32, %arg1: i32, %arg2: memref<8x2048xf32, #tpu.memory_space<vmem>>, %arg3: memref<8x2048xf32, #tpu.memory_space<vmem>>, %arg4: memref<8x2048xf32, #tpu.memory_space<vmem>>, %arg5: memref<8x2048xf32, #tpu.memory_space<vmem>>) attributes {dimension_semantics = [#tpu.dimension_semantics<parallel>, #tpu.dimension_semantics<parallel>], iteration_bounds = array<i64: 1, 1>, scalar_prefetch = 0 : i64, scratch_operands = 0 : i64, tpu.core_type = #tpu.core_type<tc>, window_params = [{transform_indices = @transform_0, window_bounds = array<i64: 8, 2048>}, {transform_indices = @transform_1, window_bounds = array<i64: 8, 2048>}, {transform_indices = @transform_2, window_bounds = array<i64: 8, 2048>}, {transform_indices = @transform_3, window_bounds = array<i64: 8, 2048>}]} {
    %c0 = arith.constant 0 : index
    %c0_0 = arith.constant 0 : index
    %0 = vector.load %arg2[%c0, %c0_0] : memref<8x2048xf32, #tpu.memory_space<vmem>>, vector<8x2048xf32>
    %c0_1 = arith.constant 0 : index
    %c0_2 = arith.constant 0 : index
    %1 = vector.load %arg3[%c0_1, %c0_2] : memref<8x2048xf32, #tpu.memory_space<vmem>>, vector<8x2048xf32>
    %cst = arith.constant 0.000000e+00 : f32
    %2 = vector.broadcast %cst : f32 to vector<8x2048xf32>
    %3 = arith.subf %2, %0 : vector<8x2048xf32>
    %cst_3 = arith.constant 0.000000e+00 : f32
    %4 = vector.broadcast %cst_3 : f32 to vector<8x2048xf32>
    %5 = arith.maximumf %3, %4 : vector<8x2048xf32>
    %6 = math.absf %3 : vector<8x2048xf32>
    %cst_4 = arith.constant 0.000000e+00 : f32
    %7 = vector.broadcast %cst_4 : f32 to vector<8x2048xf32>
    %8 = arith.subf %7, %6 : vector<8x2048xf32>
    %9 = math.exp %8 : vector<8x2048xf32>
    %10 = math.log1p %9 : vector<8x2048xf32>
    %11 = arith.addf %5, %10 : vector<8x2048xf32>
    %c0_5 = arith.constant 0 : index
    %c0_6 = arith.constant 0 : index
    %12 = vector.load %arg4[%c0_5, %c0_6] : memref<8x2048xf32, #tpu.memory_space<vmem>>, vector<8x2048xf32>
    tpu.vector_store %arg4[%c0_5, %c0_6], %11 {strides = array<i32>} : memref<8x2048xf32, #tpu.memory_space<vmem>>, vector<8x2048xf32>,
    %cst_7 = arith.constant 0.000000e+00 : f32
    %13 = vector.broadcast %cst_7 : f32 to vector<8x2048xf32>
    %14 = arith.subf %1, %13 : vector<8x2048xf32>
    %cst_8 = arith.constant 0.000000e+00 : f32
    %15 = vector.broadcast %cst_8 : f32 to vector<8x2048xf32>
    %16 = arith.maximumf %14, %15 : vector<8x2048xf32>
    %17 = math.absf %14 : vector<8x2048xf32>
    %cst_9 = arith.constant 0.000000e+00 : f32
    %18 = vector.broadcast %cst_9 : f32 to vector<8x2048xf32>
    %19 = arith.subf %18, %17 : vector<8x2048xf32>
    %20 = math.exp %19 : vector<8x2048xf32>
    %21 = math.log1p %20 : vector<8x2048xf32>
    %22 = arith.addf %16, %21 : vector<8x2048xf32>
    %c0_10 = arith.constant 0 : index
    %c0_11 = arith.constant 0 : index
    %23 = vector.load %arg5[%c0_10, %c0_11] : memref<8x2048xf32, #tpu.memory_space<vmem>>, vector<8x2048xf32>
    tpu.vector_store %arg5[%c0_10, %c0_11], %22 {strides = array<i32>} : memref<8x2048xf32, #tpu.memory_space<vmem>>, vector<8x2048xf32>,
    return
  }
  func.func @transform_0(%arg0: i32, %arg1: i32) -> (i32, i32) {
    %c0_i32 = arith.constant 0 : i32
    return %arg0, %arg1 : i32, i32
  }
  func.func @transform_1(%arg0: i32, %arg1: i32) -> (i32, i32) {
    %c0_i32 = arith.constant 0 : i32
    return %arg0, %arg1 : i32, i32
  }
  func.func @transform_2(%arg0: i32, %arg1: i32) -> (i32, i32) {
    %c0_i32 = arith.constant 0 : i32
    return %arg0, %arg1 : i32, i32
  }
  func.func @transform_3(%arg0: i32, %arg1: i32) -> (i32, i32) {
    %c0_i32 = arith.constant 0 : i32
    return %arg0, %arg1 : i32, i32
  }
}

</mosaic_0001>

<bundles_post_ra>
// kernel: tpu_custom_call.1
= control target key start
LH: loop header
LB: loop body
LE: loop exit
PB: predicated region body
PF: predicated region fallthrough
CT: control target
= control target key end

     0   :  { %9 = vsyncpa [#allocation3], 0  ;;  %s1339_s0 = inlined_call_operand.hbm [shape: f32[8,2048], index: 0, kind: input, shape index: {}]   ;;  %s1340_s1 = inlined_call_operand.hbm [shape: f32[8,2048], index: 1, kind: input, shape index: {}]   ;;  %s1341_s2 = inlined_call_operand.hbm [shape: f32[8,2048], index: 2, kind: output, shape index: {0}]   ;;  %s1342_s3 = inlined_call_operand.hbm [shape: f32[8,2048], index: 3, kind: output, shape index: {1}]  }
   0x1   :  { %10 = vsyncpa [#allocation6], 0 }
   0x2   :  { %11 = vsyncpa [#allocation4], 0 }
   0x3   :  { %12 = vsyncpa [#allocation9], 0  ;;  %s857_s12 = smov [#allocation2]   ;;  %s858_s14 = smov [#allocation5]  }
   0x4   :  { %s19_s13 = sshll.u32 %s857_s12, 4  ;;  %s29_s15 = sshll.u32 %s858_s14, 4  ;;  %s20_s13 = int_to_ptr.vmem [resolvable:$true] %s19_s13  ;;  %s30_s15 = int_to_ptr.vmem [resolvable:$true] %s29_s15 }
   0x5   :  { %s761_s18 = scalar_lea.hbm %s1339_s0, 2048 }
   0x6   :  { %p762_p0 = scmp.ne.s32.totalorder %s1339_s0, %s761_s18  ;;  %p765_p1 = scmp.lt.u32.totalorder %s761_s18, %s1339_s0 }
   0x8   :  { %p767_p2 = pnand %p765_p1, %p762_p0 }
   0xa   :  { %770 = shalt.err (!%p767_p2)
}
   0xb   :  { %s771_s23 = scalar_lea.vmem %s20_s13, 2048  ;;  %p776_p4 = scmp.lt.s32.totalorder %s20_s13, %s20_s13 }
   0xc   :  { %p772_p3 = scmp.ne.s32.totalorder %s20_s13, %s771_s23  ;;  %p777_p5 = scmp.lt.s32.totalorder %s771_s23, %s771_s23 }
   0xe   :  { %p778_p6 = por %p777_p5, %p776_p4 }
  0x10   :  { %p779_p7 = pnand %p778_p6, %p772_p3 }
  0x12   :  { %782 = shalt.err (!%p779_p7)
}
  0x13   :  { %22 = dma.hbm_to_vmem [thread:$0]  %s1339_s0, 2048, %s20_s13, [#allocation3]  }
  0x14   :  { %s783_s28 = scalar_lea.hbm %s1340_s1, 2048 }
  0x15   :  { %p784_p8 = scmp.ne.s32.totalorder %s1340_s1, %s783_s28  ;;  %p787_p9 = scmp.lt.u32.totalorder %s783_s28, %s1340_s1 }
  0x17   :  { %p789_p10 = pnand %p787_p9, %p784_p8 }
  0x19   :  { %792 = shalt.err (!%p789_p10)
}
  0x1a   :  { %s793_s6 = scalar_lea.vmem %s30_s15, 2048  ;;  %p798_p12 = scmp.lt.s32.totalorder %s30_s15, %s30_s15 }
  0x1b   :  { %p794_p11 = scmp.ne.s32.totalorder %s30_s15, %s793_s6  ;;  %p799_p13 = scmp.lt.s32.totalorder %s793_s6, %s793_s6 }
  0x1d   :  { %p800_p0 = por %p799_p13, %p798_p12 }
  0x1f   :  { %p801_p1 = pnand %p800_p0, %p794_p11 }
  0x21   :  { %804 = shalt.err (!%p801_p1)
}
  0x22   :  { %32 = dma.hbm_to_vmem [thread:$0]  %s1340_s1, 2048, %s30_s15, [#allocation6]  }
  0x23   :  { %849 = dma.done.wait [#allocation3], 2048  }
  0x24   :  { %850 = vsyncadd [#allocation3], 4294965248 }
  0x25   :  { %851 = dma.done.wait [#allocation6], 2048  }
  0x26   :  { %852 = vsyncadd [#allocation6], 4294965248  ;;  %v39_v0 = vld [vmem:[#allocation2] sm:$0xff]  ;;  %v40_v1 = vld [vmem:[#allocation2 + $0x8] sm:$0xff]  ;;  %s859_s1 = smov [#allocation7]  }
  0x27   :  { %v41_v2 = vld [vmem:[#allocation2 + $0x10] sm:$0xff]  ;;  %v71_v3 = vsub.f32 0.0, %v39_v0  ;;  %v72_v4 = vsub.f32 0.0, %v40_v1  ;;  %v42_v6 = vld [vmem:[#allocation2 + $0x18] sm:$0xff]  ;;  %v43_v7 = vld [vmem:[#allocation2 + $0x20] sm:$0xff]  ;;  %s605_s8 = sshll.u32 %s859_s1, 4  ;;  %s1175_s8 = int_to_ptr.vmem [resolvable:$true] %s605_s8 }
  0x28   :  { %v73_v5 = vsub.f32 0.0, %v41_v2  ;;  %v44_v8 = vld [vmem:[#allocation2 + $0x28] sm:$0xff]  ;;  %v74_v9 = vsub.f32 0.0, %v42_v6  ;;  %v75_v10 = vsub.f32 0.0, %v43_v7  ;;  %v45_v16 = vld [vmem:[#allocation2 + $0x30] sm:$0xff]  ;;  %v46_v20 = vld [vmem:[#allocation2 + $0x38] sm:$0xff]  ;;  %p810_p3 = scmp.lt.s32.totalorder %s1175_s8, %s1175_s8 }
  0x29   :  { %v76_v11 = vsub.f32 0.0, %v44_v8  ;;  %v103_v12 = vand.u32 2147483647, %v71_v3  ;;  %v104_v13 = vand.u32 2147483647, %v72_v4  ;;  %v47_v24 = vld [vmem:[#allocation2 + $0x40] sm:$0xff] }
  0x2a   :  { %v105_v14 = vand.u32 2147483647, %v73_v5  ;;  %v106_v15 = vand.u32 2147483647, %v74_v9  ;;  %v107_v19 = vand.u32 2147483647, %v75_v10 }
  0x2b   :  { %v119_v17 = vsub.f32 0.0, %v103_v12  ;;  %v120_v18 = vsub.f32 0.0, %v104_v13  ;;  %v108_v23 = vand.u32 2147483647, %v76_v11  ;;  %v48_v25 = vld [vmem:[#allocation2 + $0x48] sm:$0xff]  ;;  %v77_v29 = vsub.f32 0.0, %v45_v16 }
  0x2c   :  { %v121_v21 = vsub.f32 0.0, %v105_v14  ;;  %v122_v22 = vsub.f32 0.0, %v106_v15  ;;  %v123_v28 = vsub.f32 0.0, %v107_v19  ;;  %v78_v33 = vsub.f32 0.0, %v46_v20  ;;  %v905_v36 = vld [vmem:[#allocation2 + $0x50] sm:$0xff]  ;;  %v907_v37 = vld [vmem:[#allocation2 + $0x58] sm:$0xff] }
  0x2d   :  { %v135_v26 = vmul.f32 1.442695, %v119_v17  ;;  %v137_v27 = vmul.f32 1.442695, %v120_v18  ;;  %v124_v32 = vsub.f32 0.0, %v108_v23  ;;  %v79_v41 = vsub.f32 0.0, %v47_v24 }
  0x2e   :  { %v139_v30 = vmul.f32 1.442695, %v121_v21  ;;  %v141_v31 = vmul.f32 1.442695, %v122_v22  ;;  %v143_v34 = vmul.f32 1.442695, %v123_v28 }
  0x2f   :  { %633 = vpow2.f32 %v135_v26  ;;  %v109_v35 = vand.u32 2147483647, %v77_v29  ;;  %v145_v38 = vmul.f32 1.442695, %v124_v32  ;;  %v110_v39 = vand.u32 2147483647, %v78_v33 }
  0x30   :  { %635 = vpow2.f32 %v137_v27  ;;  %v80_v42 = vsub.f32 0.0, %v48_v25  ;;  %v81_v44 = vsub.f32 0.0, %v905_v36  ;;  %v82_v45 = vsub.f32 0.0, %v907_v37  ;;  %v925_v58 = vld [vmem:[#allocation2 + $0x60] sm:$0xff]  ;;  %v927_v59 = vld [vmem:[#allocation2 + $0x68] sm:$0xff]  ;;  %v943_v8 = vld [vmem:[#allocation2 + $0x70] sm:$0xff] }
  0x31   :  { %637 = vpow2.f32 %v139_v30  ;;  %v125_v40 = vsub.f32 0.0, %v109_v35  ;;  %v126_v43 = vsub.f32 0.0, %v110_v39  ;;  %v111_v47 = vand.u32 2147483647, %v79_v41  ;;  %s805_s9 = scalar_lea.vmem %s1175_s8, 2048 }
  0x32   :  { %639 = vpow2.f32 %v141_v31  ;;  %v911_v48 = vmax.f32 %v71_v3, 0.0  ;;  %v913_v49 = vmax.f32 %v72_v4, 0.0  ;;  %v112_v51 = vand.u32 2147483647, %v80_v42  ;;  %p806_p2 = scmp.ne.s32.totalorder %s1175_s8, %s805_s9  ;;  %p811_p4 = scmp.lt.s32.totalorder %s805_s9, %s805_s9 }
  0x33   :  { %641 = vpow2.f32 %v143_v34  ;;  %v147_v46 = vmul.f32 1.442695, %v125_v40  ;;  %v149_v50 = vmul.f32 1.442695, %v126_v43  ;;  %v915_v52 = vmax.f32 %v73_v5, 0.0 }
  0x34   :  { %643 = vpow2.f32 %v145_v38  ;;  %v127_v53 = vsub.f32 0.0, %v111_v47  ;;  %v113_v54 = vand.u32 2147483647, %v81_v44  ;;  %v919_v55 = vmax.f32 %v74_v9, 0.0  ;;  %v945_v9 = vld [vmem:[#allocation2 + $0x78] sm:$0xff]  ;;  %p812_p5 = por %p811_p4, %p810_p3 }
  0x35   :  { %645 = vpow2.f32 %v147_v46  ;;  %v128_v56 = vsub.f32 0.0, %v112_v51  ;;  %v923_v57 = vand.u32 2147483647, %v82_v45  ;;  %v929_v60 = vmax.f32 %v75_v10, 0.0 }
  0x36   :  { %v931_v61 = vmax.f32 %v76_v11, 0.0  ;;  %v933_v62 = vmax.f32 %v77_v29, 0.0  ;;  %v151_v63 = vmul.f32 1.442695, %v127_v53  ;;  %v935_v0 = vmax.f32 %v78_v33, 0.0  ;;  %p813_p6 = pnand %p812_p5, %p806_p2 }
  0x37   :  { %647 = vpow2.f32 %v149_v50  ;;  %v937_v1 = vmax.f32 %v79_v41, 0.0  ;;  %v153_v2 = vmul.f32 1.442695, %v128_v56  ;;  %v939_v4 = vmax.f32 %v80_v42, 0.0 }
  0x38   :  { %v129_v5 = vsub.f32 0.0, %v113_v54  ;;  %v83_v6 = vsub.f32 0.0, %v925_v58  ;;  %v84_v7 = vsub.f32 0.0, %v927_v59  ;;  %649 = vpow2.f32 %v151_v63 }
  0x39   :  { %v634_v3 = vpop.eup %633  ;;  %v130_v13 = vsub.f32 0.0, %v923_v57  ;;  %651 = vpow2.f32 %v153_v2  ;;  %v85_v20 = vsub.f32 0.0, %v943_v8  ;;  %v86_v21 = vsub.f32 0.0, %v945_v9  ;;  %v1029_v57 = vld [vmem:[#allocation5] sm:$0xff] }
  0x3a   :  { %v636_v10 = vpop.eup %635  ;;  %v167_v11 = vadd.f32 1.0, %v634_v3  ;;  %v170_v12 = vmul.f32 -0.5, %v634_v3  ;;  %v173_v15 = vand.u32 2147483647, %v634_v3  ;;  %v155_v25 = vmul.f32 1.442695, %v129_v5 }
  0x3b   :  { %v638_v14 = vpop.eup %637  ;;  %v176_v16 = vadd.f32 1.0, %v636_v10  ;;  %v179_v17 = vmul.f32 -0.5, %v636_v10  ;;  %v182_v23 = vand.u32 2147483647, %v636_v10  ;;  %v952_v28 = vand.u32 2147483647, %v83_v6 }
  0x3c   :  { %v640_v18 = vpop.eup %639  ;;  %653 = vlog2.f32 %v167_v11  ;;  %v185_v19 = vadd.f32 1.0, %v638_v14  ;;  %v188_v24 = vmul.f32 -0.5, %v638_v14  ;;  %v171_v26 = vadd.f32 1.0, %v170_v12 }
  0x3d   :  { %v642_v22 = vpop.eup %641  ;;  %655 = vlog2.f32 %v176_v16  ;;  %v194_v27 = vadd.f32 1.0, %v640_v18  ;;  %vm954_vm0 = vcmp.lt.f32.partialorder %v173_v15, 0.0004427343  ;;  %v180_v31 = vadd.f32 1.0, %v179_v17 }
  0x3e   :  { %657 = vlog2.f32 %v185_v19  ;;  %v644_v29 = vpop.eup %643  ;;  %v191_v32 = vand.u32 2147483647, %v638_v14  ;;  %v197_v33 = vmul.f32 -0.5, %v640_v18  ;;  %v189_v35 = vadd.f32 1.0, %v188_v24 }
  0x3f   :  { %v646_v34 = vpop.eup %645  ;;  %659 = vlog2.f32 %v194_v27  ;;  %v203_v38 = vadd.f32 1.0, %v642_v22  ;;  %v206_v39 = vmul.f32 -0.5, %v642_v22  ;;  %vm958_vm1 = vcmp.lt.f32.partialorder %v182_v23, 0.0004427343 }
  0x40   :  { %v198_v41 = vadd.f32 1.0, %v197_v33  ;;  %v200_v42 = vand.u32 2147483647, %v640_v18  ;;  %661 = vpow2.f32 %v155_v25  ;;  %v209_v46 = vand.u32 2147483647, %v642_v22 }
  0x41   :  { %v648_v43 = vpop.eup %647  ;;  %663 = vlog2.f32 %v203_v38  ;;  %v212_v47 = vadd.f32 1.0, %v644_v29  ;;  %v215_v50 = vmul.f32 -0.5, %v644_v29  ;;  %v172_v51 = vmul.f32 %v634_v3, %v171_v26 }
  0x42   :  { %v181_v53 = vmul.f32 %v636_v10, %v180_v31  ;;  %vm962_vm2 = vcmp.lt.f32.partialorder %v191_v32, 0.0004427343  ;;  %v221_v56 = vadd.f32 1.0, %v646_v34  ;;  %v966_v63 = vpop.eup %649  ;;  %v190_v2 = vmul.f32 %v638_v14, %v189_v35 }
  0x43   :  { %v207_v5 = vadd.f32 1.0, %v206_v39  ;;  %665 = vlog2.f32 %v212_v47  ;;  %v224_v11 = vmul.f32 -0.5, %v646_v34  ;;  %v968_v12 = vpop.eup %651  ;;  %v199_v15 = vmul.f32 %v640_v18, %v198_v41 }
  0x44   :  { %vm970_vm3 = vcmp.lt.f32.partialorder %v200_v42, 0.0004427343  ;;  %667 = vlog2.f32 %v221_v56  ;;  %v230_v3 = vadd.f32 1.0, %v648_v43  ;;  %vm974_vm4 = vcmp.lt.f32.partialorder %v209_v46, 0.0004427343 }
  0x45   :  { %v216_v19 = vadd.f32 1.0, %v215_v50  ;;  %v218_v23 = vand.u32 2147483647, %v644_v29  ;;  %v233_v14 = vmul.f32 -0.5, %v648_v43  ;;  %v227_v26 = vand.u32 2147483647, %v646_v34 }
  0x46   :  { %v654_v10 = vpop.eup %653  ;;  %669 = vlog2.f32 %v230_v3  ;;  %v239_v18 = vadd.f32 1.0, %v966_v63  ;;  %v208_v32 = vmul.f32 %v642_v22, %v207_v5  ;;  %v225_v33 = vadd.f32 1.0, %v224_v11 }
  0x47   :  { %v656_v24 = vpop.eup %655  ;;  %v169_v25 = vmul.f32 0.6931472, %v654_v10  ;;  %v236_v35 = vand.u32 2147483647, %v648_v43  ;;  %v242_v41 = vmul.f32 -0.5, %v966_v63  ;;  %v234_v22 = vadd.f32 1.0, %v233_v14 }
  0x48   :  { %v658_v27 = vpop.eup %657  ;;  %v178_v31 = vmul.f32 0.6931472, %v656_v24  ;;  %671 = vlog2.f32 %v239_v18  ;;  %vm985_vm5 = vcmp.lt.f32.partialorder %v218_v23, 0.0004427343  ;;  %v217_v11 = vmul.f32 %v644_v29, %v216_v19 }
  0x49   :  { %v175_v38 = vsel %vm954_vm0, %v172_v51, %v169_v25  ;;  %v187_v39 = vmul.f32 0.6931472, %v658_v27  ;;  %v660_v42 = vpop.eup %659  ;;  %v226_v40 = vmul.f32 %v646_v34, %v225_v33  ;;  %vm995_vm6 = vcmp.lt.f32.partialorder %v227_v26, 0.0004427343 }
  0x4a   :  { %v311_v46 = vadd.f32 %v175_v38, %v911_v48  ;;  %v184_v47 = vsel %vm958_vm1, %v181_v53, %v178_v31  ;;  %v989_v56 = vpop.eup %661  ;;  %v196_v5 = vmul.f32 0.6931472, %v660_v42  ;;  %v248_v10 = vadd.f32 1.0, %v968_v12  ;;  %v1051_v53 = vld [vmem:[#allocation5 + $0x10] sm:$0xff] }
  0x4b   :  { %v312_v30 = vadd.f32 %v184_v47, %v913_v49  ;;  %v193_v51 = vsel %vm962_vm2, %v190_v2, %v187_v39  ;;  %v664_v3 = vpop.eup %663  ;;  %vm1002_vm7 = vcmp.lt.f32.partialorder %v236_v35, 0.0004427343  ;;  %v243_v29 = vadd.f32 1.0, %v242_v41 }
  0x4c   :  { %327 = vst [vmem:[#allocation7] sm:$0xff] %v311_v46  ;;  %v313_v48 = vadd.f32 %v193_v51, %v915_v52  ;;  %v202_v49 = vsel %vm970_vm3, %v199_v15, %v196_v5  ;;  %v205_v23 = vmul.f32 0.6931472, %v664_v3  ;;  %v235_v34 = vmul.f32 %v648_v43, %v234_v22 }
  0x4d   :  { %328 = vst [vmem:[#allocation7 + $0x8] sm:$0xff] %v312_v30  ;;  %v666_v2 = vpop.eup %665  ;;  %v314_v52 = vadd.f32 %v202_v49, %v919_v55  ;;  %673 = vlog2.f32 %v248_v10  ;;  %v257_v19 = vadd.f32 1.0, %v989_v56  ;;  %v245_v15 = vand.u32 2147483647, %v966_v63  ;;  %v1042_v30 = vld [vmem:[#allocation5 + $0x8] sm:$0xff] }
  0x4e   :  { %329 = vst [vmem:[#allocation7 + $0x10] sm:$0xff] %v313_v48  ;;  %v668_v14 = vpop.eup %667  ;;  %v211_v24 = vsel %vm974_vm4, %v208_v32, %v205_v23  ;;  %v214_v16 = vmul.f32 0.6931472, %v666_v2  ;;  %v251_v25 = vmul.f32 -0.5, %v968_v12  ;;  %v254_v27 = vand.u32 2147483647, %v968_v12 }
  0x4f   :  { %330 = vst [vmem:[#allocation7 + $0x18] sm:$0xff] %v314_v52  ;;  %v315_v26 = vadd.f32 %v211_v24, %v929_v60  ;;  %v223_v18 = vmul.f32 0.6931472, %v668_v14  ;;  %675 = vlog2.f32 %v257_v19  ;;  %v244_v31 = vmul.f32 %v966_v63, %v243_v29 }
  0x50   :  { %v670_v55 = vpop.eup %669  ;;  %v220_v43 = vsel %vm985_vm5, %v217_v11, %v214_v16  ;;  %v260_v17 = vmul.f32 -0.5, %v989_v56  ;;  %v157_v32 = vmul.f32 1.442695, %v130_v13  ;;  %v131_v38 = vsub.f32 0.0, %v952_v28 }
  0x51   :  { %331 = vst [vmem:[#allocation7 + $0x20] sm:$0xff] %v315_v26  ;;  %v316_v33 = vadd.f32 %v220_v43, %v931_v61  ;;  %v229_v60 = vsel %vm995_vm6, %v226_v40, %v223_v18  ;;  %v232_v35 = vmul.f32 0.6931472, %v670_v55  ;;  %vm1025_vm8 = vcmp.lt.f32.partialorder %v245_v15, 0.0004427343  ;;  %v1070_v18 = vld [vmem:[#allocation5 + $0x18] sm:$0xff] }
  0x52   :  { %v672_v39 = vpop.eup %671  ;;  %v317_v41 = vadd.f32 %v229_v60, %v933_v62  ;;  %v252_v63 = vadd.f32 1.0, %v251_v25  ;;  %677 = vpow2.f32 %v157_v32  ;;  %vm1033_vm9 = vcmp.lt.f32.partialorder %v254_v27, 0.0004427343 }
  0x53   :  { %332 = vst [vmem:[#allocation7 + $0x28] sm:$0xff] %v316_v33  ;;  %v238_v61 = vsel %vm1002_vm7, %v235_v34, %v232_v35  ;;  %v241_v13 = vmul.f32 0.6931472, %v672_v39  ;;  %v159_v28 = vmul.f32 1.442695, %v131_v38  ;;  %v261_v47 = vadd.f32 1.0, %v260_v17 }
  0x54   :  { %333 = vst [vmem:[#allocation7 + $0x30] sm:$0xff] %v317_v41  ;;  %v318_v62 = vadd.f32 %v238_v61, %v935_v0  ;;  %v116_v50 = vand.u32 2147483647, %v84_v7  ;;  %v117_v22 = vand.u32 2147483647, %v85_v20  ;;  %v253_v3 = vmul.f32 %v968_v12, %v252_v63  ;;  %v1074_v17 = vld [vmem:[#allocation5 + $0x20] sm:$0xff] }
  0x55   :  { %v247_v51 = vsel %vm1025_vm8, %v244_v31, %v241_v13  ;;  %v263_v5 = vand.u32 2147483647, %v989_v56  ;;  %679 = vpow2.f32 %v159_v28  ;;  %v118_v11 = vand.u32 2147483647, %v86_v21 }
  0x56   :  { %334 = vst [vmem:[#allocation7 + $0x38] sm:$0xff] %v318_v62  ;;  %v319_v0 = vadd.f32 %v247_v51, %v937_v1  ;;  %v132_v48 = vsub.f32 0.0, %v116_v50  ;;  %v133_v40 = vsub.f32 0.0, %v117_v22  ;;  %v97_v49 = vmax.f32 %v81_v44, 0.0 }
  0x57   :  { %v674_v10 = vpop.eup %673  ;;  %v134_v23 = vsub.f32 0.0, %v118_v11  ;;  %v359_v54 = vand.u32 2147483647, %v1029_v57  ;;  %v360_v29 = vand.u32 2147483647, %v1042_v30  ;;  %v262_v52 = vmul.f32 %v989_v56, %v261_v47 }
  0x58   :  { %335 = vst [vmem:[#allocation7 + $0x40] sm:$0xff] %v319_v0  ;;  %v250_v2 = vmul.f32 0.6931472, %v674_v10  ;;  %v161_v1 = vmul.f32 1.442695, %v132_v48  ;;  %v1068_v56 = vmax.f32 %v82_v45, 0.0 }
  0x59   :  { %v163_v34 = vmul.f32 1.442695, %v133_v40  ;;  %v676_v12 = vpop.eup %675  ;;  %vm1058_vm10 = vcmp.lt.f32.partialorder %v263_v5, 0.0004427343  ;;  %v165_v14 = vmul.f32 1.442695, %v134_v23 }
  0x5a   :  { %v375_v24 = vsub.f32 0.0, %v359_v54  ;;  %v376_v36 = vsub.f32 0.0, %v360_v29  ;;  %v256_v44 = vsel %vm1033_vm9, %v253_v3, %v250_v2  ;;  %v259_v16 = vmul.f32 0.6931472, %v676_v12  ;;  %v1103_v5 = vld [vmem:[#allocation5 + $0x28] sm:$0xff]  ;;  %v1105_v40 = vld [vmem:[#allocation5 + $0x30] sm:$0xff] }
  0x5b   :  { %681 = vpow2.f32 %v161_v1  ;;  %v361_v15 = vand.u32 2147483647, %v1051_v53  ;;  %v320_v25 = vadd.f32 %v256_v44, %v939_v4  ;;  %v1078_v37 = vmax.f32 %v83_v6, 0.0 }
  0x5c   :  { %683 = vpow2.f32 %v163_v34  ;;  %v391_v26 = vmul.f32 1.442695, %v375_v24  ;;  %v678_v27 = vpop.eup %677  ;;  %v265_v55 = vsel %vm1058_vm10, %v262_v52, %v259_v16  ;;  %v393_v43 = vmul.f32 1.442695, %v376_v36  ;;  %v1161_v36 = vld [vmem:[#allocation5 + $0x38] sm:$0xff] }
  0x5d   :  { %685 = vpow2.f32 %v165_v14  ;;  %v377_v31 = vsub.f32 0.0, %v361_v15  ;;  %336 = vst [vmem:[#allocation7 + $0x48] sm:$0xff] %v320_v25  ;;  %v321_v32 = vadd.f32 %v265_v55, %v97_v49  ;;  %v266_v4 = vadd.f32 1.0, %v678_v27 }
  0x5e   :  { %v269_v33 = vmul.f32 -0.5, %v678_v27  ;;  %v1082_v45 = vmax.f32 %v84_v7, 0.0  ;;  %687 = vpow2.f32 %v391_v26  ;;  %v362_v35 = vand.u32 2147483647, %v1070_v18 }
  0x5f   :  { %v395_v60 = vmul.f32 1.442695, %v377_v31  ;;  %v680_v38 = vpop.eup %679  ;;  %337 = vst [vmem:[#allocation7 + $0x50] sm:$0xff] %v321_v32  ;;  %689 = vlog2.f32 %v266_v4  ;;  %v272_v39 = vand.u32 2147483647, %v678_v27  ;;  %v1087_v41 = vmax.f32 %v85_v20, 0.0 }
  0x60   :  { %v363_v58 = vand.u32 2147483647, %v1074_v17  ;;  %v270_v6 = vadd.f32 1.0, %v269_v33  ;;  %v275_v42 = vadd.f32 1.0, %v680_v38  ;;  %v278_v63 = vmul.f32 -0.5, %v680_v38 }
  0x61   :  { %691 = vpow2.f32 %v393_v43  ;;  %v1092_v59 = vmax.f32 %v86_v21, 0.0  ;;  %v378_v7 = vsub.f32 0.0, %v362_v35  ;;  %v281_v13 = vand.u32 2147483647, %v680_v38 }
  0x62   :  { %693 = vpow2.f32 %v395_v60  ;;  %v379_v61 = vsub.f32 0.0, %v363_v58  ;;  %v343_v46 = vmax.f32 %v1029_v57, 0.0  ;;  %v344_v8 = vmax.f32 %v1042_v30, 0.0 }
  0x63   :  { %695 = vlog2.f32 %v275_v42  ;;  %v345_v20 = vmax.f32 %v1051_v53, 0.0  ;;  %v346_v28 = vmax.f32 %v1070_v18, 0.0  ;;  %v397_v62 = vmul.f32 1.442695, %v378_v7 }
  0x64   :  { %v399_v47 = vmul.f32 1.442695, %v379_v61  ;;  %v271_v22 = vmul.f32 %v678_v27, %v270_v6  ;;  %vm1098_vm11 = vcmp.lt.f32.partialorder %v272_v39, 0.0004427343  ;;  %v279_v21 = vadd.f32 1.0, %v278_v63 }
  0x65   :  { %v682_v50 = vpop.eup %681  ;;  %v347_v51 = vmax.f32 %v1074_v17, 0.0  ;;  %697 = vpow2.f32 %v397_v62  ;;  %vm1107_vm12 = vcmp.lt.f32.partialorder %v281_v13, 0.0004427343  ;;  %v364_v52 = vand.u32 2147483647, %v1103_v5 }
  0x66   :  { %v684_v11 = vpop.eup %683  ;;  %v284_v0 = vadd.f32 1.0, %v682_v50  ;;  %v287_v3 = vmul.f32 -0.5, %v682_v50  ;;  %v290_v48 = vand.u32 2147483647, %v682_v50  ;;  %699 = vpow2.f32 %v399_v47 }
  0x67   :  { %v686_v10 = vpop.eup %685  ;;  %v293_v23 = vadd.f32 1.0, %v684_v11  ;;  %v296_v54 = vmul.f32 -0.5, %v684_v11  ;;  %v299_v29 = vand.u32 2147483647, %v684_v11  ;;  %v280_v34 = vmul.f32 %v680_v38, %v279_v21 }
  0x68   :  { %701 = vlog2.f32 %v284_v0  ;;  %v302_v2 = vadd.f32 1.0, %v686_v10  ;;  %v688_v1 = vpop.eup %687  ;;  %v305_v12 = vmul.f32 -0.5, %v686_v10  ;;  %v365_v19 = vand.u32 2147483647, %v1105_v40 }
  0x69   :  { %703 = vlog2.f32 %v293_v23  ;;  %v690_v14 = vpop.eup %689  ;;  %v288_v24 = vadd.f32 1.0, %v287_v3  ;;  %vm1113_vm13 = vcmp.lt.f32.partialorder %v290_v48, 0.0004427343  ;;  %v423_v44 = vadd.f32 1.0, %v688_v1 }
  0x6a   :  { %705 = vlog2.f32 %v302_v2  ;;  %v268_v15 = vmul.f32 0.6931472, %v690_v14  ;;  %v297_v25 = vadd.f32 1.0, %v296_v54  ;;  %v308_v26 = vand.u32 2147483647, %v686_v10 }
  0x6b   :  { %v692_v16 = vpop.eup %691  ;;  %v426_v27 = vmul.f32 -0.5, %v688_v1  ;;  %vm1117_vm14 = vcmp.lt.f32.partialorder %v299_v29, 0.0004427343  ;;  %v306_v31 = vadd.f32 1.0, %v305_v12  ;;  %707 = vlog2.f32 %v423_v44 }
  0x6c   :  { %v694_v55 = vpop.eup %693  ;;  %v432_v32 = vadd.f32 1.0, %v692_v16  ;;  %v274_v33 = vsel %vm1098_vm11, %v271_v22, %v268_v15  ;;  %v429_v35 = vand.u32 2147483647, %v688_v1  ;;  %v435_v38 = vmul.f32 -0.5, %v692_v16 }
  0x6d   :  { %v696_v4 = vpop.eup %695  ;;  %v427_v60 = vadd.f32 1.0, %v426_v27  ;;  %v322_v39 = vadd.f32 %v274_v33, %v1068_v56  ;;  %v289_v6 = vmul.f32 %v682_v50, %v288_v24  ;;  %v298_v42 = vmul.f32 %v684_v11, %v297_v25 }
  0x6e   :  { %v277_v58 = vmul.f32 0.6931472, %v696_v4  ;;  %709 = vlog2.f32 %v432_v32  ;;  %vm1124_vm15 = vcmp.lt.f32.partialorder %v308_v26, 0.0004427343  ;;  %v436_v7 = vadd.f32 1.0, %v435_v38  ;;  %v1173_v38 = vld [vmem:[#allocation5 + $0x40] sm:$0xff] }
  0x6f   :  { %v441_v61 = vadd.f32 1.0, %v694_v55  ;;  %v1128_v13 = vpop.eup %697  ;;  %338 = vst [vmem:[#allocation7 + $0x58] sm:$0xff] %v322_v39  ;;  %v307_v47 = vmul.f32 %v686_v10, %v306_v31  ;;  %v438_v22 = vand.u32 2147483647, %v692_v16  ;;  %v444_v9 = vmul.f32 -0.5, %v694_v55 }
  0x70   :  { %v283_v62 = vsel %vm1107_vm12, %v280_v34, %v277_v58  ;;  %v1132_v56 = vpop.eup %699  ;;  %v428_v21 = vmul.f32 %v688_v1, %v427_v60  ;;  %vm1135_vm0 = vcmp.lt.f32.partialorder %v429_v35, 0.0004427343  ;;  %v447_v48 = vand.u32 2147483647, %v694_v55 }
  0x71   :  { %v323_v50 = vadd.f32 %v283_v62, %v1078_v37  ;;  %711 = vlog2.f32 %v441_v61  ;;  %v445_v3 = vadd.f32 1.0, %v444_v9  ;;  %v450_v23 = vadd.f32 1.0, %v1128_v13 }
  0x72   :  { %v702_v0 = vpop.eup %701  ;;  %v380_v49 = vsub.f32 0.0, %v364_v52  ;;  %v1140_v29 = vmul.f32 %v692_v16, %v436_v7  ;;  %v453_v2 = vmul.f32 -0.5, %v1128_v13  ;;  %v459_v37 = vadd.f32 1.0, %v1132_v56  ;;  %v1185_v7 = vld [vmem:[#allocation5 + $0x50] sm:$0xff] }
  0x73   :  { %v704_v54 = vpop.eup %703  ;;  %339 = vst [vmem:[#allocation7 + $0x60] sm:$0xff] %v323_v50  ;;  %v286_v10 = vmul.f32 0.6931472, %v702_v0  ;;  %vm1144_vm1 = vcmp.lt.f32.partialorder %v438_v22, 0.0004427343  ;;  %713 = vlog2.f32 %v450_v23  ;;  %v462_v44 = vmul.f32 -0.5, %v1132_v56 }
  0x74   :  { %v706_v1 = vpop.eup %705  ;;  %v295_v34 = vmul.f32 0.6931472, %v704_v54  ;;  %v456_v14 = vand.u32 2147483647, %v1128_v13  ;;  %715 = vlog2.f32 %v459_v37  ;;  %v1155_v26 = vmul.f32 %v694_v55, %v445_v3  ;;  %v1192_v50 = vld [vmem:[#allocation5 + $0x58] sm:$0xff] }
  0x75   :  { %v292_v52 = vsel %vm1113_vm13, %v289_v6, %v286_v10  ;;  %v304_v24 = vmul.f32 0.6931472, %v706_v1  ;;  %v708_v16 = vpop.eup %707  ;;  %vm1157_vm2 = vcmp.lt.f32.partialorder %v447_v48, 0.0004427343  ;;  %v454_v33 = vadd.f32 1.0, %v453_v2  ;;  %v1180_v6 = vld [vmem:[#allocation5 + $0x48] sm:$0xff] }
  0x76   :  { %v324_v15 = vadd.f32 %v292_v52, %v1082_v45  ;;  %v301_v25 = vsel %vm1117_vm14, %v298_v42, %v295_v34  ;;  %v425_v4 = vmul.f32 0.6931472, %v708_v16  ;;  %vm1167_vm3 = vcmp.lt.f32.partialorder %v456_v14, 0.0004427343 }
  0x77   :  { %v325_v31 = vadd.f32 %v301_v25, %v1087_v41  ;;  %v310_v32 = vsel %vm1124_vm15, %v307_v47, %v304_v24  ;;  %v401_v43 = vmul.f32 1.442695, %v380_v49  ;;  %v381_v35 = vsub.f32 0.0, %v365_v19 }
  0x78   :  { %v710_v60 = vpop.eup %709  ;;  %340 = vst [vmem:[#allocation7 + $0x68] sm:$0xff] %v324_v15  ;;  %v326_v45 = vadd.f32 %v310_v32, %v1092_v59  ;;  %v431_v41 = vsel %vm1135_vm0, %v428_v21, %v425_v4  ;;  %v463_v58 = vadd.f32 1.0, %v462_v44  ;;  %v366_v59 = vand.u32 2147483647, %v1161_v36 }
  0x79   :  { %341 = vst [vmem:[#allocation7 + $0x70] sm:$0xff] %v325_v31  ;;  %v434_v39 = vmul.f32 0.6931472, %v710_v60  ;;  %v567_v19 = vadd.f32 %v431_v41, %v343_v46  ;;  %v465_v42 = vand.u32 2147483647, %v1132_v56  ;;  %717 = vpow2.f32 %v401_v43 }
  0x7a   :  { %342 = vst [vmem:[#allocation7 + $0x78] sm:$0xff] %v326_v45  ;;  %v403_v63 = vmul.f32 1.442695, %v381_v35  ;;  %v455_v47 = vmul.f32 %v1128_v13, %v454_v33  ;;  %v382_v22 = vsub.f32 0.0, %v366_v59  ;;  %v367_v9 = vand.u32 2147483647, %v1173_v38 }
  0x7b   :  { %v712_v61 = vpop.eup %711  ;;  %v440_v62 = vsel %vm1144_vm1, %v1140_v29, %v434_v39 }
  0x7c   :  { %816 = shalt.err (!%p813_p6)
}
  0x7d   :  { %s817_s12 = scalar_lea.hbm %s1341_s2, 2048 }
  0x7e   :  { %p818_p7 = scmp.ne.s32.totalorder %s1341_s2, %s817_s12  ;;  %p821_p8 = scmp.lt.u32.totalorder %s817_s12, %s1341_s2 }
  0x80   :  { %p823_p9 = pnand %p821_p8, %p818_p7 }
  0x82   :  { %826 = shalt.err (!%p823_p9)
}
  0x83   :  { %608 = dma.vmem_to_hbm [thread:$0]  %s1175_s8, 2048, %s1341_s2, [#allocation4]   ;;  %583 = vst [vmem:[#allocation8] sm:$0xff] %v567_v19  ;;  %v568_v57 = vadd.f32 %v440_v62, %v344_v8  ;;  %v443_v46 = vmul.f32 0.6931472, %v712_v61  ;;  %719 = vpow2.f32 %v403_v63  ;;  %v464_v21 = vmul.f32 %v1132_v56, %v463_v58  ;;  %v714_v48 = vpop.eup %713  ;;  %v1224_v54 = vld [vmem:[#allocation5 + $0x60] sm:$0xff] }
  0x84   :  { %v368_v13 = vand.u32 2147483647, %v1180_v6  ;;  %v405_v11 = vmul.f32 1.442695, %v382_v22  ;;  %v383_v0 = vsub.f32 0.0, %v367_v9  ;;  %v716_v56 = vpop.eup %715  ;;  %v1231_v24 = vld [vmem:[#allocation5 + $0x68] sm:$0xff] }
  0x85   :  { %v369_v3 = vand.u32 2147483647, %v1185_v7  ;;  %584 = vst [vmem:[#allocation8 + $0x8] sm:$0xff] %v568_v57  ;;  %v449_v23 = vsel %vm1157_vm2, %v1155_v26, %v443_v46  ;;  %vm1219_vm4 = vcmp.lt.f32.partialorder %v465_v42, 0.0004427343  ;;  %v1237_v16 = vld [vmem:[#allocation5 + $0x70] sm:$0xff]  ;;  %v718_v27 = vpop.eup %717 }
  0x86   :  { %v384_v30 = vsub.f32 0.0, %v368_v13  ;;  %v370_v8 = vand.u32 2147483647, %v1192_v50  ;;  %v569_v10 = vadd.f32 %v449_v23, %v345_v20  ;;  %v452_v29 = vmul.f32 0.6931472, %v714_v48  ;;  %v1245_v39 = vld [vmem:[#allocation5 + $0x78] sm:$0xff] }
  0x87   :  { %721 = vpow2.f32 %v405_v11  ;;  %v407_v2 = vmul.f32 1.442695, %v383_v0  ;;  %v461_v37 = vmul.f32 0.6931472, %v716_v56  ;;  %v385_v34 = vsub.f32 0.0, %v369_v3  ;;  %s860_s2 = smov [#allocation8]  }
  0x88   :  { %v409_v1 = vmul.f32 1.442695, %v384_v30  ;;  %v386_v12 = vsub.f32 0.0, %v370_v8  ;;  %585 = vst [vmem:[#allocation8 + $0x10] sm:$0xff] %v569_v10  ;;  %v458_v14 = vsel %vm1167_vm3, %v455_v47, %v452_v29  ;;  %v371_v52 = vand.u32 2147483647, %v1224_v54 }
  0x89   :  { %723 = vpow2.f32 %v407_v2  ;;  %v570_v53 = vadd.f32 %v458_v14, %v346_v28  ;;  %v467_v20 = vsel %vm1219_vm4, %v464_v21, %v461_v37  ;;  %v411_v44 = vmul.f32 1.442695, %v385_v34  ;;  %s615_s19 = sshll.u32 %s860_s2, 4  ;;  %s616_s19 = int_to_ptr.vmem [resolvable:$true] %s615_s19 }
  0x8a   :  { %725 = vpow2.f32 %v409_v1  ;;  %v571_v15 = vadd.f32 %v467_v20, %v347_v51  ;;  %v413_v25 = vmul.f32 1.442695, %v386_v12  ;;  %v387_v26 = vsub.f32 0.0, %v371_v52  ;;  %s827_s20 = scalar_lea.vmem %s616_s19, 2048  ;;  %p832_p11 = scmp.lt.s32.totalorder %s616_s19, %s616_s19 }
  0x8b   :  { %586 = vst [vmem:[#allocation8 + $0x18] sm:$0xff] %v570_v53  ;;  %727 = vpow2.f32 %v411_v44  ;;  %v372_v31 = vand.u32 2147483647, %v1231_v24  ;;  %v468_v18 = vadd.f32 1.0, %v718_v27  ;;  %v373_v28 = vand.u32 2147483647, %v1237_v16  ;;  %p828_p10 = scmp.ne.s32.totalorder %s616_s19, %s827_s20  ;;  %p833_p12 = scmp.lt.s32.totalorder %s827_s20, %s827_s20 }
  0x8c   :  { %587 = vst [vmem:[#allocation8 + $0x20] sm:$0xff] %v571_v15  ;;  %729 = vpow2.f32 %v413_v25  ;;  %v415_v4 = vmul.f32 1.442695, %v387_v26  ;;  %v471_v60 = vmul.f32 -0.5, %v718_v27  ;;  %v348_v17 = vmax.f32 %v1103_v5, 0.0 }
  0x8d   :  { %v720_v32 = vpop.eup %719  ;;  %v388_v33 = vsub.f32 0.0, %v372_v31  ;;  %731 = vlog2.f32 %v468_v18  ;;  %v474_v43 = vand.u32 2147483647, %v718_v27  ;;  %v349_v35 = vmax.f32 %v1105_v40, 0.0  ;;  %p834_p13 = por %p833_p12, %p832_p11 }
  0x8e   :  { %v477_v45 = vadd.f32 1.0, %v720_v32  ;;  %733 = vpow2.f32 %v415_v4  ;;  %v389_v41 = vsub.f32 0.0, %v373_v28  ;;  %v480_v58 = vmul.f32 -0.5, %v720_v32 }
  0x8f   :  { %v417_v51 = vmul.f32 1.442695, %v388_v33  ;;  %v350_v59 = vmax.f32 %v1161_v36, 0.0  ;;  %v472_v61 = vadd.f32 1.0, %v471_v60  ;;  %v351_v62 = vmax.f32 %v1173_v38, 0.0  ;;  %p835_p0 = pnand %p834_p13, %p828_p10 }
  0x90   :  { %735 = vlog2.f32 %v477_v45  ;;  %v352_v5 = vmax.f32 %v1180_v6, 0.0  ;;  %v483_v22 = vand.u32 2147483647, %v720_v32  ;;  %v374_v57 = vand.u32 2147483647, %v1245_v39 }
  0x91   :  { %v722_v55 = vpop.eup %721  ;;  %737 = vpow2.f32 %v417_v51  ;;  %vm1251_vm5 = vcmp.lt.f32.partialorder %v474_v43, 0.0004427343  ;;  %v353_v21 = vmax.f32 %v1185_v7, 0.0  ;;  %v419_v11 = vmul.f32 1.442695, %v389_v41 }
  0x92   :  { %v486_v19 = vadd.f32 1.0, %v722_v55  ;;  %v489_v42 = vmul.f32 -0.5, %v722_v55  ;;  %v481_v3 = vadd.f32 1.0, %v480_v58  ;;  %v492_v23 = vand.u32 2147483647, %v722_v55 }
  0x93   :  { %v724_v63 = vpop.eup %723  ;;  %v473_v10 = vmul.f32 %v718_v27, %v472_v61  ;;  %vm1261_vm6 = vcmp.lt.f32.partialorder %v483_v22, 0.0004427343  ;;  %v390_v37 = vsub.f32 0.0, %v374_v57  ;;  %v355_v6 = vmax.f32 %v1224_v54, 0.0 }
  0x94   :  { %v726_v47 = vpop.eup %725  ;;  %739 = vlog2.f32 %v486_v19  ;;  %v495_v9 = vadd.f32 1.0, %v724_v63  ;;  %v490_v48 = vadd.f32 1.0, %v489_v42  ;;  %v498_v30 = vmul.f32 -0.5, %v724_v63 }
  0x95   :  { %v504_v13 = vadd.f32 1.0, %v726_v47  ;;  %v1256_v0 = vpop.eup %727  ;;  %v507_v8 = vmul.f32 -0.5, %v726_v47  ;;  %v501_v2 = vand.u32 2147483647, %v724_v63  ;;  %v510_v34 = vand.u32 2147483647, %v726_v47 }
  0x96   :  { %741 = vlog2.f32 %v495_v9  ;;  %v1258_v49 = vpop.eup %729  ;;  %v513_v56 = vadd.f32 1.0, %v1256_v0  ;;  %v516_v12 = vmul.f32 -0.5, %v1256_v0  ;;  %v482_v20 = vmul.f32 %v720_v32, %v481_v3 }
  0x97   :  { %743 = vlog2.f32 %v504_v13  ;;  %v732_v1 = vpop.eup %731  ;;  %v522_v14 = vadd.f32 1.0, %v1258_v49  ;;  %v491_v44 = vmul.f32 %v722_v55, %v490_v48  ;;  %vm1269_vm7 = vcmp.lt.f32.partialorder %v492_v23, 0.0004427343 }
  0x98   :  { %745 = vlog2.f32 %v513_v56  ;;  %v1267_v52 = vpop.eup %733  ;;  %v470_v53 = vmul.f32 0.6931472, %v732_v1  ;;  %v499_v26 = vadd.f32 1.0, %v498_v30  ;;  %v508_v27 = vadd.f32 1.0, %v507_v8 }
  0x99   :  { %747 = vlog2.f32 %v522_v14  ;;  %v531_v31 = vadd.f32 1.0, %v1267_v52  ;;  %vm1276_vm8 = vcmp.lt.f32.partialorder %v501_v2, 0.0004427343  ;;  %v525_v32 = vmul.f32 -0.5, %v1258_v49 }
  0x9a   :  { %v736_v25 = vpop.eup %735  ;;  %v476_v18 = vsel %vm1251_vm5, %v473_v10, %v470_v53  ;;  %vm1283_vm9 = vcmp.lt.f32.partialorder %v510_v34, 0.0004427343  ;;  %v517_v51 = vadd.f32 1.0, %v516_v12  ;;  %v519_v41 = vand.u32 2147483647, %v1256_v0 }
  0x9b   :  { %v479_v28 = vmul.f32 0.6931472, %v736_v25  ;;  %v1281_v33 = vpop.eup %737  ;;  %v572_v60 = vadd.f32 %v476_v18, %v348_v17  ;;  %749 = vlog2.f32 %v531_v31  ;;  %v534_v58 = vmul.f32 -0.5, %v1267_v52 }
  0x9c   :  { %v540_v19 = vadd.f32 1.0, %v1281_v33  ;;  %v500_v61 = vmul.f32 %v724_v63, %v499_v26  ;;  %v509_v22 = vmul.f32 %v726_v47, %v508_v27  ;;  %v526_v57 = vadd.f32 1.0, %v525_v32 }
  0x9d   :  { %v485_v43 = vsel %vm1261_vm6, %v482_v20, %v479_v28  ;;  %588 = vst [vmem:[#allocation8 + $0x28] sm:$0xff] %v572_v60  ;;  %v528_v46 = vand.u32 2147483647, %v1258_v49  ;;  %v421_v13 = vmul.f32 1.442695, %v390_v37  ;;  %v518_v30 = vmul.f32 %v1256_v0, %v517_v51 }
  0x9e   :  { %v740_v55 = vpop.eup %739  ;;  %v573_v17 = vadd.f32 %v485_v43, %v349_v35  ;;  %751 = vlog2.f32 %v540_v19  ;;  %v543_v40 = vmul.f32 -0.5, %v1281_v33  ;;  %v535_v47 = vadd.f32 1.0, %v534_v58 }
  0x9f   :  { %v488_v42 = vmul.f32 0.6931472, %v740_v55  ;;  %753 = vpow2.f32 %v419_v11  ;;  %vm1303_vm10 = vcmp.lt.f32.partialorder %v519_v41, 0.0004427343  ;;  %v537_v29 = vand.u32 2147483647, %v1267_v52 }
  0xa0   :  { %v742_v9 = vpop.eup %741  ;;  %589 = vst [vmem:[#allocation8 + $0x30] sm:$0xff] %v573_v17  ;;  %755 = vpow2.f32 %v421_v13  ;;  %v527_v11 = vmul.f32 %v1258_v49, %v526_v57  ;;  %v354_v1 = vmax.f32 %v1192_v50, 0.0  ;;  %vm529_vm11 = vcmp.lt.f32.partialorder %v528_v46, 0.0004427343 }
  0xa1   :  { %v744_v3 = vpop.eup %743  ;;  %v494_v48 = vsel %vm1269_vm7, %v491_v44, %v488_v42  ;;  %v497_v23 = vmul.f32 0.6931472, %v742_v9  ;;  %v544_v34 = vadd.f32 1.0, %v543_v40  ;;  %v546_v14 = vand.u32 2147483647, %v1281_v33 }
  0xa2   :  { %v574_v35 = vadd.f32 %v494_v48, %v350_v59  ;;  %v506_v63 = vmul.f32 0.6931472, %v744_v3  ;;  %v746_v8 = vpop.eup %745  ;;  %vm538_vm12 = vcmp.lt.f32.partialorder %v537_v29, 0.0004427343  ;;  %v357_v43 = vmax.f32 %v1237_v16, 0.0 }
  0xa3   :  { %v503_v56 = vsel %vm1276_vm8, %v500_v61, %v497_v23  ;;  %v515_v59 = vmul.f32 0.6931472, %v746_v8  ;;  %v748_v2 = vpop.eup %747  ;;  %v545_v44 = vmul.f32 %v1281_v33, %v544_v34  ;;  %vm547_vm13 = vcmp.lt.f32.partialorder %v546_v14, 0.0004427343 }
  0xa4   :  { %590 = vst [vmem:[#allocation8 + $0x38] sm:$0xff] %v574_v35  ;;  %v575_v0 = vadd.f32 %v503_v56, %v351_v62  ;;  %v512_v36 = vsel %vm1283_vm9, %v509_v22, %v506_v63  ;;  %v524_v38 = vmul.f32 0.6931472, %v748_v2  ;;  %v536_v62 = vmul.f32 %v1267_v52, %v535_v47 }
  0xa5   :  { %v576_v37 = vadd.f32 %v512_v36, %v352_v5  ;;  %v521_v12 = vsel %vm1303_vm10, %v518_v30, %v515_v59  ;;  %v750_v53 = vpop.eup %749  ;;  %v356_v52 = vmax.f32 %v1231_v24, 0.0  ;;  %v358_v17 = vmax.f32 %v1245_v39, 0.0 }
  0xa6   :  { %591 = vst [vmem:[#allocation8 + $0x40] sm:$0xff] %v575_v0  ;;  %v577_v49 = vadd.f32 %v521_v12, %v353_v21  ;;  %v530_v50 = vsel %vm529_vm11, %v527_v11, %v524_v38  ;;  %v533_v5 = vmul.f32 0.6931472, %v750_v53 }
  0xa7   :  { %592 = vst [vmem:[#allocation8 + $0x48] sm:$0xff] %v576_v37  ;;  %v578_v20 = vadd.f32 %v530_v50, %v354_v1 }
  0xa8   :  { %593 = vst [vmem:[#allocation8 + $0x50] sm:$0xff] %v577_v49  ;;  %v752_v15 = vpop.eup %751  ;;  %v539_v25 = vsel %vm538_vm12, %v536_v62, %v533_v5 }
  0xa9   :  { %594 = vst [vmem:[#allocation8 + $0x58] sm:$0xff] %v578_v20  ;;  %v579_v26 = vadd.f32 %v539_v25, %v355_v6  ;;  %v542_v27 = vmul.f32 0.6931472, %v752_v15  ;;  %v754_v31 = vpop.eup %753 }
  0xaa   :  { %v756_v7 = vpop.eup %755  ;;  %v549_v54 = vadd.f32 1.0, %v754_v31  ;;  %v552_v4 = vmul.f32 -0.5, %v754_v31  ;;  %v555_v60 = vand.u32 2147483647, %v754_v31 }
  0xab   :  { %595 = vst [vmem:[#allocation8 + $0x60] sm:$0xff] %v579_v26  ;;  %v548_v21 = vsel %vm547_vm13, %v545_v44, %v542_v27  ;;  %v558_v28 = vadd.f32 1.0, %v756_v7  ;;  %v561_v32 = vmul.f32 -0.5, %v756_v7  ;;  %v564_v24 = vand.u32 2147483647, %v756_v7 }
  0xac   :  { %v580_v18 = vadd.f32 %v548_v21, %v356_v52  ;;  %757 = vlog2.f32 %v549_v54  ;;  %v553_v33 = vadd.f32 1.0, %v552_v4  ;;  %vm556_vm14 = vcmp.lt.f32.partialorder %v555_v60, 0.0004427343 }
  0xad   :  { %759 = vlog2.f32 %v558_v28  ;;  %v562_v45 = vadd.f32 1.0, %v561_v32  ;;  %vm565_vm15 = vcmp.lt.f32.partialorder %v564_v24, 0.0004427343 }
  0xae   :  { %596 = vst [vmem:[#allocation8 + $0x68] sm:$0xff] %v580_v18  ;;  %v554_v51 = vmul.f32 %v754_v31, %v553_v33 }
  0xaf   :  { %v563_v41 = vmul.f32 %v756_v7, %v562_v45 }
  0xb6   :  { %v758_v55 = vpop.eup %757 }
  0xb7   :  { %v760_v58 = vpop.eup %759  ;;  %v551_v19 = vmul.f32 0.6931472, %v758_v55 }
  0xb8   :  { %v560_v42 = vmul.f32 0.6931472, %v760_v58 }
  0xb9   :  { %v557_v61 = vsel %vm556_vm14, %v554_v51, %v551_v19 }
  0xba   :  { %v581_v22 = vadd.f32 %v557_v61, %v357_v43  ;;  %v566_v9 = vsel %vm565_vm15, %v563_v41, %v560_v42 }
  0xbb   :  { %v582_v57 = vadd.f32 %v566_v9, %v358_v17 }
  0xbc   :  { %597 = vst [vmem:[#allocation8 + $0x70] sm:$0xff] %v581_v22 }
  0xbd   :  { %598 = vst [vmem:[#allocation8 + $0x78] sm:$0xff] %v582_v57 }
  0xbe   :  { %838 = shalt.err (!%p835_p0)
}
  0xbf   :  { %s839_s23 = scalar_lea.hbm %s1342_s3, 2048 }
  0xc0   :  { %p840_p1 = scmp.ne.s32.totalorder %s1342_s3, %s839_s23  ;;  %p843_p2 = scmp.lt.u32.totalorder %s839_s23, %s1342_s3 }
  0xc2   :  { %p845_p3 = pnand %p843_p2, %p840_p1 }
  0xc4   :  { %848 = shalt.err (!%p845_p3)
}
  0xc5   :  { %618 = dma.vmem_to_hbm [thread:$0]  %s616_s19, 2048, %s1342_s3, [#allocation9]  }
  0xc6   :  { %853 = dma.done.wait [#allocation4], 2048  }
  0xc7   :  { %854 = vsyncadd [#allocation4], 4294965248 }
  0xc8   :  { %855 = dma.done.wait [#allocation9], 2048  }
  0xc9   :  { %856 = vsyncadd [#allocation9], 4294965248 }
  0xca   :  { %625 = vsyncpa [#allocation3], 1 }
  0xcb   :  { %626 = vsyncpa [#allocation6], 1 }
  0xcc   :  { %627 = vsyncpa [#allocation4], 1 }
  0xcd   :  { %628 = vsyncpa [#allocation9], 1 }

</bundles_post_ra>
